<compile_context>
chip_gen: v6e
topology: v6e:2x2x1
jax: 0.10.0
libtpu: 0.0.40
codegen_flags: <defaults>
</compile_context>

<pallas_src>
import functools

import jax
import jax.numpy as jnp
from jax.experimental import pallas as pl
from jax.experimental.pallas import tpu as pltpu

LANE = 128
_VMEM_LIMIT = 48 * 1024 * 1024   # > scoped defaults, < v7x 64 MiB physical


# ---------------------------------------------------------------------------
# Fused kernel: whole slab resident in VMEM (1 HBM read + 1 HBM write).
# ---------------------------------------------------------------------------
def _dorefa_fused_kernel(x_ref, o_ref, *, levels):
    x = x_ref[...].astype(jnp.float32)
    # tanh monotone & odd  =>  max|tanh(x)| == tanh(max|x|).  The reduce runs
    # on the raw input (VPU/XLU only); tanh hits the EUP once for the scalar
    # and once per element in the streamed quant chain below.
    max_w = jnp.tanh(jnp.max(jnp.abs(x)))
    c0 = 0.5 / max_w                       # exact scalar divide, once
    y = jnp.tanh(x) * c0 + 0.5             # in [0, 1]
    q = jnp.floor(y * levels + 0.5) * (1.0 / levels)
    o_ref[...] = (max_w * (2.0 * q - 1.0)).astype(o_ref.dtype)


# ---------------------------------------------------------------------------
# Two-pass tiled path for tensors too large to keep resident in VMEM.
# ---------------------------------------------------------------------------
def _max_abs_kernel(x_ref, o_ref, acc_ref, *, valid_rows, need_mask):
    i = pl.program_id(0)
    tile_rows = x_ref.shape[0]

    @pl.when(i == 0)
    def _():
        acc_ref[...] = jnp.zeros_like(acc_ref)   # 0 is the identity for max|x|

    a = jnp.abs(x_ref[...].astype(jnp.float32))
    if need_mask:  # statically compiled in only when the last block is partial
        ridx = i * tile_rows + jax.lax.broadcasted_iota(jnp.int32, a.shape, 0)
        a = jnp.where(ridx < valid_rows, a, 0.0)

    # vreg-aligned partial reduce: (G, 8, 128) max over axis 0 is pure VPU
    # elementwise work with whole-vreg scratch stores; no per-step XLU pushes.
    acc_ref[...] = jnp.maximum(
        acc_ref[...], a.reshape(tile_rows // 8, 8, LANE).max(axis=0))

    @pl.when(i == pl.num_programs(0) - 1)
    def _():
        # Single cross-sublane/lane collapse + the ONE tanh of the run.
        o_ref[...] = jnp.full((1, 1), jnp.tanh(jnp.max(acc_ref[...])),
                              dtype=o_ref.dtype)


def _dorefa_quant_kernel(maxw_ref, x_ref, o_ref, *, levels):
    max_w = maxw_ref[0, 0]                 # scalar read from SMEM
    c0 = 0.5 / max_w                       # exact divide, once per tile
    y = jnp.tanh(x_ref[...].astype(jnp.float32)) * c0 + 0.5   # in [0, 1]
    q = jnp.floor(y * levels + 0.5) * (1.0 / levels)
    o_ref[...] = (max_w * (2.0 * q - 1.0)).astype(o_ref.dtype)


def dorefa_weight_quantize(x, w_bits, *, fused_max_elems=1 << 20,
                           tile_rows_p1=8192, tile_rows_p2=4096):
    """JAX/Pallas equivalent of dorefa_WeightQuantizer(w_bits).forward(x)."""
    if w_bits == 32:
        return x
    assert w_bits != 1, "Binary quantization is not supported"

    orig_shape = x.shape
    orig_dtype = x.dtype
    n = x.size
    levels = float(2 ** w_bits - 1)        # == 1 / scale

    # Lane-dense [rows, 128] slab.  Copy-free reshape when n % 128 == 0;
    # otherwise pad only the ragged tail (zeros: |0| cannot raise max|x|,
    # and padded outputs are sliced off below).
    if n % LANE == 0:
        rows = n // LANE
        x2 = x.reshape(rows, LANE)
        padded = False
    else:
        rows = pl.cdiv(n, LANE)
        x2 = jnp.pad(x.reshape(-1), (0, rows * LANE - n)).reshape(rows, LANE)
        padded = True

    if rows * LANE <= fused_max_elems:
        # ---- fused single-block path (typical conv weights) ----------------
        out2 = pl.pallas_call(
            functools.partial(_dorefa_fused_kernel, levels=levels),
            out_shape=jax.ShapeDtypeStruct((rows, LANE), orig_dtype),
            compiler_params=pltpu.CompilerParams(
                vmem_limit_bytes=_VMEM_LIMIT),
        )(x2)
    else:
        # ---- two-pass tiled path -------------------------------------------
        # Keep native-dtype tiles aligned to whole packed (sublane, 128)
        # layout tiles: 8 sublanes for 32-bit, 16 for bf16, 32 for 8-bit.
        sub = 8 * max(1, 4 // x2.dtype.itemsize)
        assert tile_rows_p1 % sub == 0 and tile_rows_p2 % sub == 0

        # pass 1: tanh(global max |x|)  (== max|tanh(x)|, tanh monotone/odd).
        num_tiles_1 = pl.cdiv(rows, tile_rows_p1)
        need_mask = (rows % tile_rows_p1) != 0
        max_w = pl.pallas_call(
            functools.partial(_max_abs_kernel,
                              valid_rows=rows, need_mask=need_mask),
            out_shape=jax.ShapeDtypeStruct((1, 1), jnp.float32),
            grid=(num_tiles_1,),
            in_specs=[pl.BlockSpec((tile_rows_p1, LANE), lambda i: (i, 0))],
            out_specs=pl.BlockSpec((1, 1), lambda i: (0, 0)),
            scratch_shapes=[pltpu.VMEM((8, LANE), jnp.float32)],
            compiler_params=pltpu.CompilerParams(
                dimension_semantics=("arbitrary",),
                vmem_limit_bytes=_VMEM_LIMIT),
        )(x2)

        # pass 2: elementwise quantization; max_w scalar comes in via SMEM.
        num_tiles_2 = pl.cdiv(rows, tile_rows_p2)
        out2 = pl.pallas_call(
            functools.partial(_dorefa_quant_kernel, levels=levels),
            out_shape=jax.ShapeDtypeStruct((rows, LANE), orig_dtype),
            grid=(num_tiles_2,),
            in_specs=[
                pl.BlockSpec(memory_space=pltpu.MemorySpace.SMEM),
                pl.BlockSpec((tile_rows_p2, LANE), lambda i: (i, 0)),
            ],
            out_specs=pl.BlockSpec((tile_rows_p2, LANE), lambda i: (i, 0)),
            compiler_params=pltpu.CompilerParams(
                dimension_semantics=("parallel",),
                vmem_limit_bytes=_VMEM_LIMIT),
        )(max_w, x2)

    if padded:
        return out2.reshape(-1)[:n].reshape(orig_shape)
    return out2.reshape(orig_shape)


def _reference(x, w_bits):
    """Pure-JAX reference mirroring the PyTorch forward (f32 math)."""
    x = x.astype(jnp.float32)
    out = jnp.tanh(x)
    max_w = jnp.max(jnp.abs(out))
    out = out / 2.0 / max_w + 0.5
    scale = 1.0 / float(2 ** w_bits - 1)
    z = out / scale
    out = jnp.sign(z) * jnp.floor(jnp.abs(z) + 0.5) * scale
    return max_w * (2.0 * out - 1.0)


if __name__ == "__main__":
    key = jax.random.PRNGKey(0)
    w_bits = 4
    k1, k2, k3, k4 = jax.random.split(key, 4)

    # 1) Small conv weight (OIHW), numel not a multiple of 128 -> fused path.
    w1 = jax.random.normal(k1, (8, 4, 3, 3), dtype=jnp.float32)
    y1 = jax.block_until_ready(dorefa_weight_quantize(w1, w_bits))
    r1 = _reference(w1, w_bits)
    assert y1.shape == w1.shape and y1.dtype == w1.dtype
    assert jnp.allclose(y1, r1, atol=1e-5, rtol=1e-5), "fused path mismatch"

    # 2) bf16 input (native-dtype DMA path), fused.
    w1b = w1.astype(jnp.bfloat16)
    y1b = jax.block_until_ready(dorefa_weight_quantize(w1b, w_bits))
    r1b = _reference(w1b, w_bits)
    assert y1b.shape == w1b.shape and y1b.dtype == w1b.dtype
    assert jnp.allclose(y1b.astype(jnp.float32), r1b, atol=2e-2), \
        "fused bf16 path mismatch"

    # 3) Force the two-pass tiled path, exact tiles (3072 elems, 3 tiles).
    w2 = jax.random.normal(k2, (2, 4, 16, 24), dtype=jnp.float32)
    y2 = jax.block_until_ready(
        dorefa_weight_quantize(w2, w_bits, fused_max_elems=0,
                               tile_rows_p1=8, tile_rows_p2=8))
    r2 = _reference(w2, w_bits)
    assert y2.shape == w2.shape and y2.dtype == w2.dtype
    assert jnp.allclose(y2, r2, atol=1e-5, rtol=1e-5), "tiled path mismatch"

    # 4) Tiled path with a partial last tile (2560 elems -> rows=20, tiles of 8).
    w3 = jax.random.normal(k3, (2, 4, 20, 16), dtype=jnp.float32)
    y3 = jax.block_until_ready(
        dorefa_weight_quantize(w3, w_bits, fused_max_elems=0,
                               tile_rows_p1=8, tile_rows_p2=8))
    r3 = _reference(w3, w_bits)
    assert jnp.allclose(y3, r3, atol=1e-5, rtol=1e-5), "masked tile mismatch"

    # 5) Exactly symmetric +/- max elements (locks in rounding at y ~ 0 and 1).
    v = jax.random.normal(k4, (4, 128), dtype=jnp.float32)
    w4 = jnp.concatenate([v, -v], axis=0)
    y4 = jax.block_until_ready(dorefa_weight_quantize(w4, w_bits))
    r4 = _reference(w4, w_bits)
    assert jnp.allclose(y4, r4, atol=1e-5, rtol=1e-5), "+/- max mismatch"

    # 6) w_bits == 32 passthrough.
    y5 = dorefa_weight_quantize(w1, 32)
    assert bool((y5 == w1).all())

    print("KERNEL_OK")
</pallas_src>

<mosaic_0001>
module attributes {stable_mosaic.version = 11 : i64} {
  func.func @_dorefa_fused_kernel(%arg0: memref<3x128xf32, #tpu.memory_space<vmem>>, %arg1: memref<3x128xf32, #tpu.memory_space<vmem>>) attributes {dimension_semantics = [], scalar_prefetch = 0 : i64, scratch_operands = 0 : i64, tpu.core_type = #tpu.core_type<tc>} {
    %c0 = arith.constant 0 : index
    %c0_0 = arith.constant 0 : index
    %0 = vector.load %arg0[%c0, %c0_0] : memref<3x128xf32, #tpu.memory_space<vmem>>, vector<3x128xf32>
    %1 = math.absf %0 : vector<3x128xf32>
    %2 = vector.shape_cast %1 : vector<3x128xf32> to vector<1x3x128xf32>
    %cst = arith.constant dense<0xFF800000> : vector<1xf32>
    %3 = vector.multi_reduction <maximumf>, %2, %cst [1, 2] : vector<1x3x128xf32> to vector<1xf32>
    %4 = vector.shape_cast %3 : vector<1xf32> to vector<1x1x1xf32>
    %5 = vector.extract %4[0, 0, 0] : f32 from vector<1x1x1xf32>
    %6 = math.tanh %5 : f32
    %cst_1 = arith.constant 5.000000e-01 : f32
    %7 = arith.divf %cst_1, %6 : f32
    %8 = math.tanh %0 : vector<3x128xf32>
    %9 = vector.broadcast %7 : f32 to vector<3x128xf32>
    %10 = arith.mulf %8, %9 : vector<3x128xf32>
    %cst_2 = arith.constant 5.000000e-01 : f32
    %11 = vector.broadcast %cst_2 : f32 to vector<3x128xf32>
    %12 = arith.addf %10, %11 : vector<3x128xf32>
    %cst_3 = arith.constant 1.500000e+01 : f32
    %13 = vector.broadcast %cst_3 : f32 to vector<3x128xf32>
    %14 = arith.mulf %12, %13 : vector<3x128xf32>
    %cst_4 = arith.constant 5.000000e-01 : f32
    %15 = vector.broadcast %cst_4 : f32 to vector<3x128xf32>
    %16 = arith.addf %14, %15 : vector<3x128xf32>
    %17 = math.floor %16 : vector<3x128xf32>
    %cst_5 = arith.constant 0.0666666701 : f32
    %18 = vector.broadcast %cst_5 : f32 to vector<3x128xf32>
    %19 = arith.mulf %17, %18 : vector<3x128xf32>
    %cst_6 = arith.constant 2.000000e+00 : f32
    %20 = vector.broadcast %cst_6 : f32 to vector<3x128xf32>
    %21 = arith.mulf %20, %19 : vector<3x128xf32>
    %cst_7 = arith.constant 1.000000e+00 : f32
    %22 = vector.broadcast %cst_7 : f32 to vector<3x128xf32>
    %23 = arith.subf %21, %22 : vector<3x128xf32>
    %24 = vector.broadcast %6 : f32 to vector<3x128xf32>
    %25 = arith.mulf %24, %23 : vector<3x128xf32>
    %c0_8 = arith.constant 0 : index
    %c0_9 = arith.constant 0 : index
    %26 = vector.load %arg1[%c0_8, %c0_9] : memref<3x128xf32, #tpu.memory_space<vmem>>, vector<3x128xf32>
    tpu.vector_store %arg1[%c0_8, %c0_9], %25 {strides = array<i32>} : memref<3x128xf32, #tpu.memory_space<vmem>>, vector<3x128xf32>,
    return
  }
}

</mosaic_0001>

<bundles_post_ra>
// kernel: tpu_custom_call.1
= control target key start
LH: loop header
LB: loop body
LE: loop exit
PB: predicated region body
PF: predicated region fallthrough
CT: control target
= control target key end

     0   :  { %6 = vsyncpa [#allocation3], 0  ;;  %s146_s0 = inlined_call_operand.hbm [shape: f32[3,128], index: 0, kind: input, shape index: {}]   ;;  %s147_s1 = inlined_call_operand.hbm [shape: f32[3,128], index: 1, kind: output, shape index: {}]  }
   0x1   :  { %7 = vsyncpa [#allocation4], 0  ;;  %s128_s6 = smov [#allocation2]  }
   0x2   :  { %s14_s7 = sshll.u32 %s128_s6, 4  ;;  %s15_s7 = int_to_ptr.vmem [resolvable:$true] %s14_s7 }
   0x3   :  { %s92_s8 = scalar_lea.vmem %s15_s7, 64  ;;  %p97_p1 = scmp.lt.s32.totalorder %s15_s7, %s15_s7 }
   0x4   :  { %p93_p0 = scmp.ne.s32.totalorder %s15_s7, %s92_s8  ;;  %p98_p2 = scmp.lt.s32.totalorder %s92_s8, %s92_s8 }
   0x6   :  { %p99_p3 = por %p98_p2, %p97_p1 }
   0x8   :  { %p100_p4 = pnand %p99_p3, %p93_p0 }
   0xa   :  { %103 = shalt.err (!%p100_p4)
}
   0xb   :  { %17 = dma.hbm_to_vmem [thread:$0]  %s146_s0, 64, %s15_s7, [#allocation3]  }
   0xc   :  { %124 = dma.done.wait [#allocation3], 64  }
   0xd   :  { %125 = vsyncadd [#allocation3], 4294967232  ;;  %v21_v0 = vld [vmem:[#allocation2] sm:$0x7]  ;;  %vm23_vm0 = vcmask 1042432   ;;  %s129_s14 = smov [#allocation5]  }
   0xe   :  { %v22_v1 = vand.u32 2147483647, %v21_v0  ;;  %s60_s15 = sshll.u32 %s129_s14, 4  ;;  %s61_s15 = int_to_ptr.vmem [resolvable:$true] %s60_s15 }
   0xf   :  { %s104_s16 = scalar_lea.vmem %s61_s15, 64  ;;  %p109_p6 = scmp.lt.s32.totalorder %s61_s15, %s61_s15 }
  0x10   :  { %v24_v2 = vsel %vm23_vm0, %v22_v1, -inf  ;;  %p105_p5 = scmp.ne.s32.totalorder %s61_s15, %s104_s16  ;;  %p110_p7 = scmp.lt.s32.totalorder %s104_s16, %s104_s16 }
  0x11   :  { %25 = vmax.xlane.f32.xlu0 %v24_v2 }
  0x12   :  { %p111_p8 = por %p110_p7, %p109_p6 }
  0x14   :  { %p112_p9 = pnand %p111_p8, %p105_p5 }
  0x9a   :  { %v26_v3 = vpop.xlane.xlu0 %25 }
  0x9b   :  { %v27_v4 = vrot.slane %v26_v3, 4 }
  0x9d   :  { %v28_v5 = vmax.f32 %v26_v3, %v27_v4 }
  0x9f   :  { %v29_v6 = vrot.slane %v28_v5, 2 }
  0xa1   :  { %v30_v7 = vmax.f32 %v28_v5, %v29_v6 }
  0xa3   :  { %v31_v8 = vrot.slane %v30_v7, 1 }
  0xa5   :  { %v32_v9 = vmax.f32 %v30_v7, %v31_v8 }
  0xa7   :  { %70 = vpush %v32_v9 }
  0xd8   :  { %s71_s11 = spop %70 }
  0xd9   :  { %v34_v10 = vstv %s71_s11 }
  0xda   :  { %78 = vtanh.f32 %v34_v10 }
  0xe7   :  { %v79_v11 = vpop.eup %78 }
  0xe8   :  { %72 = vpush %v79_v11 }
 0x119   :  { %s73_s0 = spop %72 }
 0x11a   :  { %v37_v12 = vstv %s73_s0 }
 0x11b   :  { %80 = vrcp.f32 %v37_v12 }
 0x11c   :  { %82 = vtanh.f32 %v21_v0 }
 0x128   :  { %v81_v13 = vpop.eup %80 }
 0x129   :  { %74 = vpush %v81_v13  ;;  %v83_v14 = vpop.eup %82 }
 0x15a   :  { %s75_s12 = spop %74 }
 0x15b   :  { %s40_s13 = smul.f32 0.5, %s75_s12 }
 0x15d   :  { %v42_v15 = vstv %s40_s13 }
 0x15e   :  { %v43_v16 = vmul.f32 %v83_v14, %v42_v15 }
 0x160   :  { %v44_v17 = vadd.f32 0.5, %v43_v16 }
 0x162   :  { %v45_v18 = vmul.f32 15.0, %v44_v17 }
 0x164   :  { %v46_v19 = vadd.f32 0.5, %v45_v18 }
 0x166   :  { %v47_v20 = vfloor.f32 %v46_v19 }
 0x168   :  { %v48_v21 = vmul.f32 0.06666667, %v47_v20 }
 0x16a   :  { %v49_v22 = vmul.f32 2.0, %v48_v21 }
 0x16c   :  { %v69_v23 = vadd.f32 -1.0, %v49_v22 }
 0x16e   :  { %v52_v24 = vmul.f32 %v69_v23, %v37_v12 }
 0x170   :  { %53 = vst [vmem:[#allocation5] sm:$0x7] %v52_v24 }
 0x171   :  { %115 = shalt.err (!%p112_p9)
}
 0x172   :  { %63 = dma.vmem_to_hbm [thread:$0]  %s61_s15, 64, %s147_s1, [#allocation4]  }
 0x173   :  { %126 = dma.done.wait [#allocation4], 64  }
 0x174   :  { %127 = vsyncadd [#allocation4], 4294967232 }
 0x175   :  { %67 = vsyncpa [#allocation3], 1 }
 0x176   :  { %68 = vsyncpa [#allocation4], 1 }

</bundles_post_ra>
